<compile_context>
chip_gen: v7x
topology: tpu7x:2x2x1
jax: 0.10.0
libtpu: 0.0.40
codegen_flags: <defaults>
</compile_context>

<pallas_src>
import functools

import jax
import jax.numpy as jnp
import numpy as np
from jax.experimental import pallas as pl
from jax.experimental.pallas import tpu as pltpu


# ----------------------------- kernel ----------------------------------------


def _gvp_layer(feats, vec_s, wh3T, whu3T, wmT, bm, wgT, bg, *, last, compute_dtype):
    """One vector-gated GVP layer, feature-major (nodes on the 128-lane axis).

    feats : (F, TN)        scalar features, compute_dtype
    vec_s : (3*V, TN)      vector channels, row index = coord*V + channel
    wh3T  : (3*H, 3*V)     block-diagonal Wh^T        (per-coordinate V -> H mix)
    whu3T : (3*U, 3*V)     block-diagonal (Wh @ Wu)^T (pre-fused V -> U mix)
    wmT   : (F, F+H)       message weight, transposed (single K = F+H dot)
    bm    : (F, 1) f32
    wgT   : (U, F)         gate weight, transposed
    bg    : (U, 1) f32
    """
    H = wh3T.shape[0] // 3

    # Two *independent* MXU launches (Whu pre-fused); nodes stay lane-dense.
    vh_s = jnp.dot(wh3T, vec_s, preferred_element_type=jnp.float32)     # (3H, TN) f32
    vu_s = jnp.dot(whu3T, vec_s, preferred_element_type=jnp.float32)    # (3U, TN) f32

    # L2 norm over xyz: sublane-aligned static slices (H is a multiple of 8).
    # No eps, matching the reference forward.
    # TODO(synk): add an eps inside the sqrt if this kernel is ever differentiated.
    sh = jnp.sqrt(vh_s[0:H] * vh_s[0:H]
                  + vh_s[H:2 * H] * vh_s[H:2 * H]
                  + vh_s[2 * H:3 * H] * vh_s[2 * H:3 * H])               # (H, TN) f32

    # Linear([feats, sh]) as one K = F+H matmul (sublane concat, F/H multiples of 8).
    cat = jnp.concatenate([feats, sh.astype(compute_dtype)], axis=0)     # (F+H, TN)
    pre = jnp.dot(wmT, cat, preferred_element_type=jnp.float32) + bm     # (F, TN) f32
    pre = pre.astype(compute_dtype)
    feats_out = pre * jax.nn.sigmoid(pre)                                # SiLU

    gate = (jnp.dot(wgT, feats_out, preferred_element_type=jnp.float32)
            + bg).astype(compute_dtype)                                  # (U, TN)

    vu_c = vu_s.astype(compute_dtype)
    if last:
        # Identity vector activation; U == 1 so (3, TN) * (1, TN) broadcasts.
        vec_out = vu_c * gate
    else:
        gate = jax.nn.sigmoid(gate)
        gate3 = jnp.concatenate([gate, gate, gate], axis=0)              # (3U, TN)
        vec_out = vu_c * gate3
    return feats_out, vec_out


def _node_position_update_kernel(
    scal_ref, pos_ref, vec_ref,
    wh_s_ref, whu_s_ref, wm_s_ref, bm_s_ref, wg_s_ref, bg_s_ref,
    wh_l_ref, whu_l_ref, wm_l_ref, bm_l_ref, wg_l_ref, bg_l_ref,
    out_ref,
    *, compute_dtype,
):
    feats = scal_ref[...].astype(compute_dtype)          # (F, TN)
    vec_s = vec_ref[...].astype(compute_dtype)           # (3V, TN)

    n_hidden = wh_s_ref.shape[0]                         # layers 0 .. L-2 (stacked)
    for l in range(n_hidden):                            # static, unrolled
        feats, vec_s = _gvp_layer(
            feats, vec_s,
            wh_s_ref[l], whu_s_ref[l], wm_s_ref[l], bm_s_ref[l],
            wg_s_ref[l], bg_s_ref[l],
            last=False, compute_dtype=compute_dtype)

    # Last layer with its true U = 1 weights: the update is already a
    # lane-dense (3, TN) slab, so the tail is a single f32 add.
    _, upd = _gvp_layer(
        feats, vec_s,
        wh_l_ref[...], whu_l_ref[...], wm_l_ref[...], bm_l_ref[...],
        wg_l_ref[...], bg_l_ref[...],
        last=True, compute_dtype=compute_dtype)          # (3, TN)

    out_ref[...] = (pos_ref[...].astype(jnp.float32)
                    + upd.astype(jnp.float32)).astype(out_ref.dtype)


# ----------------------------- params prep -----------------------------------


def _prepare_params(params, n_scalars, n_vec_channels, compute_dtype):
    """Per-layer GVP params -> feature-major kernel weights.

    Returns (stacked, last): `stacked` are six (L-1, ...) arrays for the first
    L-1 (identically shaped) layers, `last` are six arrays for the final layer
    with its true U = 1 shapes (no zero padding).
    """
    F, V = n_scalars, n_vec_channels
    assert len(params) >= 2, "need at least 2 GVP layers (module default is 3)"
    eye3 = jnp.eye(3, dtype=jnp.float32)

    def prep_layer(p):
        wh, wu, wm, bm, wg, bg = p
        H, U = wu.shape
        assert wh.shape == (V, H) and H == V, "this module always has H == V"
        assert wm.shape == (F + H, F) and bm.shape == (1, F)
        assert wg.shape == (F, U) and bg.shape == (1, U)
        whu = wh @ wu                                     # pre-fused V -> U mix
        wh3T = jnp.kron(eye3, wh.T).astype(compute_dtype)    # (3H, 3V) block-diag
        whu3T = jnp.kron(eye3, whu.T).astype(compute_dtype)  # (3U, 3V) block-diag
        wmT = wm.T.astype(compute_dtype)                  # (F, F+H)
        bmT = bm.T.astype(jnp.float32)                    # (F, 1)  bias stays f32
        wgT = wg.T.astype(compute_dtype)                  # (U, F)
        bgT = bg.T.astype(jnp.float32)                    # (U, 1)  bias stays f32
        return wh3T, whu3T, wmT, bmT, wgT, bgT

    prepped = [prep_layer(p) for p in params]
    *hidden, last = prepped
    stacked = tuple(jnp.stack(xs, axis=0) for xs in zip(*hidden))
    return stacked, last


def _default_tile_n(N):
    """>= 2 grid steps when possible (v7x megacore); 512..4096-wide tiles preferred."""
    if N % 128 != 0 or N < 256:
        return N                                          # single grid step
    cap = min(4096, N // 2)
    best = None
    for t in range(128, cap + 1, 128):
        if N % t == 0:
            best = t                                      # largest divisor <= cap
    return best if best is not None else N


# ----------------------------- wrappers ---------------------------------------


def node_position_update_pallas_fm(scalars_fm, positions_fm, vectors_fm, params, *,
                                   tile_n=None, compute_dtype=jnp.float32):
    """Feature-major entry point (use this to avoid wrapper transposes upstream).

    scalars_fm   (F, N)
    positions_fm (3, N)
    vectors_fm   (3*V, N)   row index = coord*V + channel
    Returns updated positions as a coordinate-major (3, N) array.

    compute_dtype: jnp.float32 (default; required quality on v5e) or jnp.bfloat16
    (recommended on v6e/v7x: bf16 VPU/EUP throughput, f32 MXU accumulation).
    """
    F, N = scalars_fm.shape
    V3, Nv = vectors_fm.shape
    assert Nv == N and positions_fm.shape == (3, N) and V3 % 3 == 0
    V = V3 // 3

    if tile_n is None:
        tile_n = _default_tile_n(N)
    assert N % tile_n == 0
    assert tile_n == N or tile_n % 128 == 0, (
        "node tiles must be a multiple of 128 (or tile_n == N)")

    stacked, last = _prepare_params(params, F, V, compute_dtype)

    def node_spec(rows):
        return pl.BlockSpec((rows, tile_n), lambda i: (0, i))

    def const_spec(arr):
        nd = arr.ndim
        return pl.BlockSpec(arr.shape, lambda i, nd=nd: (0,) * nd)

    in_specs = ([node_spec(F), node_spec(3), node_spec(V3)]
                + [const_spec(w) for w in stacked]
                + [const_spec(w) for w in last])
    out_spec = node_spec(3)

    kernel = functools.partial(_node_position_update_kernel,
                               compute_dtype=compute_dtype)

    out_fm = pl.pallas_call(
        kernel,
        out_shape=jax.ShapeDtypeStruct((3, N), positions_fm.dtype),
        grid_spec=pltpu.PrefetchScalarGridSpec(
            num_scalar_prefetch=0,
            grid=(N // tile_n,),
            in_specs=in_specs,
            out_specs=out_spec,
        ),
        compiler_params=pltpu.CompilerParams(
            dimension_semantics=("parallel",)),
    )(scalars_fm, positions_fm, vectors_fm, *stacked, *last)
    return out_fm


def node_position_update_pallas(scalars, positions, vectors, params, *,
                                tile_n=None, compute_dtype=jnp.float32):
    """scalars (N,F), positions (N,3), vectors (N,V,3) -> updated positions (N,3).

    Thin layout adapter around `node_position_update_pallas_fm`.  Jit this
    together with the producer so the transposes fuse; for large N, prefer the
    feature-major entry point and keep data in that layout end-to-end.
    """
    N, F = scalars.shape
    Nv, V, C = vectors.shape
    assert C == 3 and Nv == N and positions.shape == (N, 3)

    scal_fm = jnp.transpose(scalars, (1, 0))             # (F, N)
    pos_fm = jnp.transpose(positions, (1, 0))            # (3, N)
    vec_fm = jnp.transpose(vectors, (2, 1, 0)).reshape(3 * V, N)  # (3V, N)

    out_fm = node_position_update_pallas_fm(
        scal_fm, pos_fm, vec_fm, params,
        tile_n=tile_n, compute_dtype=compute_dtype)
    return jnp.transpose(out_fm, (1, 0))                 # back to (N, 3)


# ----------------------------- params & reference ----------------------------


def init_params(key, n_scalars, n_vec_channels, n_gvps=3):
    """Deterministic synthetic init (scaled normals for well-conditioned values)."""
    F, V = n_scalars, n_vec_channels
    params = []
    for i in range(n_gvps):
        U = 1 if i == n_gvps - 1 else V                  # last GVP emits one vector channel
        H = max(V, U)
        key, *ks = jax.random.split(key, 7)
        wh = jax.random.normal(ks[0], (V, H), jnp.float32) / np.sqrt(V)
        wu = jax.random.normal(ks[1], (H, U), jnp.float32) / np.sqrt(H)
        wm = jax.random.normal(ks[2], (F + H, F), jnp.float32) / np.sqrt(F + H)
        bm = jax.random.normal(ks[3], (1, F), jnp.float32) * 0.01
        wg = jax.random.normal(ks[4], (F, U), jnp.float32) / np.sqrt(F)
        bg = jax.random.normal(ks[5], (1, U), jnp.float32) * 0.01
        params.append((wh, wu, wm, bm, wg, bg))
    return params


def node_position_update_reference(scalars, positions, vectors, params):
    """Plain-JAX mirror of the PyTorch forward (for validation)."""
    feats = scalars
    vec = vectors                                        # (N, V, 3)
    n_layers = len(params)
    for i, (wh, wu, wm, bm, wg, bg) in enumerate(params):
        last = i == n_layers - 1
        Vh = jnp.einsum('nvc,vh->nhc', vec, wh)
        Vu = jnp.einsum('nhc,hu->nuc', Vh, wu)
        sh = jnp.linalg.norm(Vh, axis=-1)
        s = jnp.concatenate([feats, sh], axis=-1)
        feats = jax.nn.silu(s @ wm + bm)
        gate = feats @ wg + bg
        if not last:
            gate = jax.nn.sigmoid(gate)                  # Sigmoid vectors_activation
        vec = gate[..., None] * Vu                       # Identity on the last layer
    return positions + vec[:, 0, :]                      # vector_updates.squeeze(1)


# ----------------------------- main -------------------------------------------


if __name__ == "__main__":
    key = jax.random.PRNGKey(0)
    N, F, V = 64, 32, 16                                 # nodes, n_scalars, n_vec_channels
    k1, k2, k3, k4 = jax.random.split(key, 4)
    scalars = jax.random.normal(k1, (N, F), jnp.float32)
    positions = jax.random.normal(k2, (N, 3), jnp.float32)
    vectors = jax.random.normal(k3, (N, V, 3), jnp.float32)
    params = init_params(k4, F, V, n_gvps=3)             # n_cp_feats=0 (module default)

    ref = node_position_update_reference(scalars, positions, vectors, params)

    # f32 path (v5e default; exact check).
    fwd_f32 = jax.jit(lambda s, p, v: node_position_update_pallas(s, p, v, params))
    out_f32 = jax.block_until_ready(fwd_f32(scalars, positions, vectors))
    assert out_f32.shape == (N, 3)
    np.testing.assert_allclose(np.asarray(out_f32), np.asarray(ref),
                               rtol=2e-4, atol=2e-4)

    # bf16-intermediate path (recommended on v6e / v7x); loose sanity check only.
    fwd_bf16 = jax.jit(lambda s, p, v: node_position_update_pallas(
        s, p, v, params, compute_dtype=jnp.bfloat16))
    out_bf16 = jax.block_until_ready(fwd_bf16(scalars, positions, vectors))
    assert out_bf16.shape == (N, 3)
    assert bool(jnp.all(jnp.isfinite(out_bf16)))
    assert float(jnp.max(jnp.abs(out_bf16 - ref))) < 0.5

    print("KERNEL_OK")
</pallas_src>

<mosaic_0001>
module attributes {stable_mosaic.version = 11 : i64} {
  func.func @_node_position_update_kernel(%arg0: i32, %arg1: memref<32x64xf32, #tpu.memory_space<vmem>>, %arg2: memref<3x64xf32, #tpu.memory_space<vmem>>, %arg3: memref<48x64xf32, #tpu.memory_space<vmem>>, %arg4: memref<2x48x48xf32, #tpu.memory_space<vmem>>, %arg5: memref<2x48x48xf32, #tpu.memory_space<vmem>>, %arg6: memref<2x32x48xf32, #tpu.memory_space<vmem>>, %arg7: memref<2x32x1xf32, #tpu.memory_space<vmem>>, %arg8: memref<2x16x32xf32, #tpu.memory_space<vmem>>, %arg9: memref<2x16x1xf32, #tpu.memory_space<vmem>>, %arg10: memref<48x48xf32, #tpu.memory_space<vmem>>, %arg11: memref<3x48xf32, #tpu.memory_space<vmem>>, %arg12: memref<32x48xf32, #tpu.memory_space<vmem>>, %arg13: memref<32x1xf32, #tpu.memory_space<vmem>>, %arg14: memref<1x32xf32, #tpu.memory_space<vmem>>, %arg15: memref<1x1xf32, #tpu.memory_space<vmem>>, %arg16: memref<3x64xf32, #tpu.memory_space<vmem>>) attributes {dimension_semantics = [#tpu.dimension_semantics<parallel>], iteration_bounds = array<i64: 1>, scalar_prefetch = 0 : i64, scratch_operands = 0 : i64, tpu.core_type = #tpu.core_type<tc>, window_params = [{transform_indices = @transform_0, window_bounds = array<i64: 32, 64>}, {transform_indices = @transform_1, window_bounds = array<i64: 3, 64>}, {transform_indices = @transform_2, window_bounds = array<i64: 48, 64>}, {pipeline_mode = #tpu.pipeline_mode<synchronous>, transform_indices = @transform_3, window_bounds = array<i64: 2, 48, 48>}, {pipeline_mode = #tpu.pipeline_mode<synchronous>, transform_indices = @transform_4, window_bounds = array<i64: 2, 48, 48>}, {pipeline_mode = #tpu.pipeline_mode<synchronous>, transform_indices = @transform_5, window_bounds = array<i64: 2, 32, 48>}, {pipeline_mode = #tpu.pipeline_mode<synchronous>, transform_indices = @transform_6, window_bounds = array<i64: 2, 32, 1>}, {pipeline_mode = #tpu.pipeline_mode<synchronous>, transform_indices = @transform_7, window_bounds = array<i64: 2, 16, 32>}, {pipeline_mode = #tpu.pipeline_mode<synchronous>, transform_indices = @transform_8, window_bounds = array<i64: 2, 16, 1>}, {pipeline_mode = #tpu.pipeline_mode<synchronous>, transform_indices = @transform_9, window_bounds = array<i64: 48, 48>}, {pipeline_mode = #tpu.pipeline_mode<synchronous>, transform_indices = @transform_10, window_bounds = array<i64: 3, 48>}, {pipeline_mode = #tpu.pipeline_mode<synchronous>, transform_indices = @transform_11, window_bounds = array<i64: 32, 48>}, {pipeline_mode = #tpu.pipeline_mode<synchronous>, transform_indices = @transform_12, window_bounds = array<i64: 32, 1>}, {pipeline_mode = #tpu.pipeline_mode<synchronous>, transform_indices = @transform_13, window_bounds = array<i64: 1, 32>}, {pipeline_mode = #tpu.pipeline_mode<synchronous>, transform_indices = @transform_14, window_bounds = array<i64: 1, 1>}, {transform_indices = @transform_15, window_bounds = array<i64: 3, 64>}]} {
    %c0 = arith.constant 0 : index
    %c0_0 = arith.constant 0 : index
    %0 = vector.load %arg1[%c0, %c0_0] : memref<32x64xf32, #tpu.memory_space<vmem>>, vector<32x64xf32>
    %c0_1 = arith.constant 0 : index
    %c0_2 = arith.constant 0 : index
    %1 = vector.load %arg3[%c0_1, %c0_2] : memref<48x64xf32, #tpu.memory_space<vmem>>, vector<48x64xf32>
    %c0_3 = arith.constant 0 : index
    %c0_4 = arith.constant 0 : index
    %c0_5 = arith.constant 0 : index
    %2 = vector.load %arg4[%c0_3, %c0_4, %c0_5] : memref<2x48x48xf32, #tpu.memory_space<vmem>>, vector<1x48x48xf32>
    %3 = vector.shape_cast %2 : vector<1x48x48xf32> to vector<48x48xf32>
    %c0_6 = arith.constant 0 : index
    %c0_7 = arith.constant 0 : index
    %c0_8 = arith.constant 0 : index
    %4 = vector.load %arg5[%c0_6, %c0_7, %c0_8] : memref<2x48x48xf32, #tpu.memory_space<vmem>>, vector<1x48x48xf32>
    %5 = vector.shape_cast %4 : vector<1x48x48xf32> to vector<48x48xf32>
    %c0_9 = arith.constant 0 : index
    %c0_10 = arith.constant 0 : index
    %c0_11 = arith.constant 0 : index
    %6 = vector.load %arg6[%c0_9, %c0_10, %c0_11] : memref<2x32x48xf32, #tpu.memory_space<vmem>>, vector<1x32x48xf32>
    %7 = vector.shape_cast %6 : vector<1x32x48xf32> to vector<32x48xf32>
    %c0_12 = arith.constant 0 : index
    %c0_13 = arith.constant 0 : index
    %c0_14 = arith.constant 0 : index
    %8 = vector.load %arg7[%c0_12, %c0_13, %c0_14] : memref<2x32x1xf32, #tpu.memory_space<vmem>>, vector<1x32x1xf32>
    %9 = vector.shape_cast %8 : vector<1x32x1xf32> to vector<32x1xf32>
    %c0_15 = arith.constant 0 : index
    %c0_16 = arith.constant 0 : index
    %c0_17 = arith.constant 0 : index
    %10 = vector.load %arg8[%c0_15, %c0_16, %c0_17] : memref<2x16x32xf32, #tpu.memory_space<vmem>>, vector<1x16x32xf32>
    %11 = vector.shape_cast %10 : vector<1x16x32xf32> to vector<16x32xf32>
    %c0_18 = arith.constant 0 : index
    %c0_19 = arith.constant 0 : index
    %c0_20 = arith.constant 0 : index
    %12 = vector.load %arg9[%c0_18, %c0_19, %c0_20] : memref<2x16x1xf32, #tpu.memory_space<vmem>>, vector<1x16x1xf32>
    %13 = vector.shape_cast %12 : vector<1x16x1xf32> to vector<16x1xf32>
    %cst = arith.constant dense<0.000000e+00> : vector<48x64xf32>
    %14 = tpu.matmul %3, %1, %cst {dimension_numbers = #tpu.dot_dimension_numbers<[1], [0], [0], [1], [0, 0, 1, 1], [], []>} : vector<48x48xf32>, vector<48x64xf32>, vector<48x64xf32> -> vector<48x64xf32>
    %cst_21 = arith.constant dense<0.000000e+00> : vector<48x64xf32>
    %15 = tpu.matmul %5, %1, %cst_21 {dimension_numbers = #tpu.dot_dimension_numbers<[1], [0], [0], [1], [0, 0, 1, 1], [], []>} : vector<48x48xf32>, vector<48x64xf32>, vector<48x64xf32> -> vector<48x64xf32>
    %16 = vector.extract_strided_slice %14 {offsets = [0, 0], sizes = [16, 64], strides = [1, 1]} : vector<48x64xf32> to vector<16x64xf32>
    %17 = vector.extract_strided_slice %14 {offsets = [0, 0], sizes = [16, 64], strides = [1, 1]} : vector<48x64xf32> to vector<16x64xf32>
    %18 = arith.mulf %16, %17 : vector<16x64xf32>
    %19 = vector.extract_strided_slice %14 {offsets = [16, 0], sizes = [16, 64], strides = [1, 1]} : vector<48x64xf32> to vector<16x64xf32>
    %20 = vector.extract_strided_slice %14 {offsets = [16, 0], sizes = [16, 64], strides = [1, 1]} : vector<48x64xf32> to vector<16x64xf32>
    %21 = arith.mulf %19, %20 : vector<16x64xf32>
    %22 = arith.addf %18, %21 : vector<16x64xf32>
    %23 = vector.extract_strided_slice %14 {offsets = [32, 0], sizes = [16, 64], strides = [1, 1]} : vector<48x64xf32> to vector<16x64xf32>
    %24 = vector.extract_strided_slice %14 {offsets = [32, 0], sizes = [16, 64], strides = [1, 1]} : vector<48x64xf32> to vector<16x64xf32>
    %25 = arith.mulf %23, %24 : vector<16x64xf32>
    %26 = arith.addf %22, %25 : vector<16x64xf32>
    %27 = math.sqrt %26 : vector<16x64xf32>
    %28 = tpu.concatenate %0, %27 in 0 : vector<32x64xf32>, vector<16x64xf32> -> vector<48x64xf32>
    %cst_22 = arith.constant dense<0.000000e+00> : vector<32x64xf32>
    %29 = tpu.matmul %7, %28, %cst_22 {dimension_numbers = #tpu.dot_dimension_numbers<[1], [0], [0], [1], [0, 0, 1, 1], [], []>} : vector<32x48xf32>, vector<48x64xf32>, vector<32x64xf32> -> vector<32x64xf32>
    %30 = vector.broadcast %9 : vector<32x1xf32> to vector<32x64xf32>
    %31 = arith.addf %29, %30 : vector<32x64xf32>
    %32 = arith.negf %31 : vector<32x64xf32>
    %33 = math.exp %32 : vector<32x64xf32>
    %cst_23 = arith.constant 1.000000e+00 : f32
    %34 = vector.broadcast %cst_23 : f32 to vector<32x64xf32>
    %35 = arith.addf %34, %33 : vector<32x64xf32>
    %36 = arith.divf %34, %35 : vector<32x64xf32>
    %37 = arith.mulf %31, %36 : vector<32x64xf32>
    %cst_24 = arith.constant dense<0.000000e+00> : vector<16x64xf32>
    %38 = tpu.matmul %11, %37, %cst_24 {dimension_numbers = #tpu.dot_dimension_numbers<[1], [0], [0], [1], [0, 0, 1, 1], [], []>} : vector<16x32xf32>, vector<32x64xf32>, vector<16x64xf32> -> vector<16x64xf32>
    %39 = vector.broadcast %13 : vector<16x1xf32> to vector<16x64xf32>
    %40 = arith.addf %38, %39 : vector<16x64xf32>
    %41 = arith.negf %40 : vector<16x64xf32>
    %42 = math.exp %41 : vector<16x64xf32>
    %cst_25 = arith.constant 1.000000e+00 : f32
    %43 = vector.broadcast %cst_25 : f32 to vector<16x64xf32>
    %44 = arith.addf %43, %42 : vector<16x64xf32>
    %45 = arith.divf %43, %44 : vector<16x64xf32>
    %46 = tpu.concatenate %45, %45, %45 in 0 : vector<16x64xf32>, vector<16x64xf32>, vector<16x64xf32> -> vector<48x64xf32>
    %47 = arith.mulf %15, %46 : vector<48x64xf32>
    %c1 = arith.constant 1 : index
    %c0_26 = arith.constant 0 : index
    %c0_27 = arith.constant 0 : index
    %48 = vector.load %arg4[%c1, %c0_26, %c0_27] : memref<2x48x48xf32, #tpu.memory_space<vmem>>, vector<1x48x48xf32>
    %49 = vector.shape_cast %48 : vector<1x48x48xf32> to vector<48x48xf32>
    %c1_28 = arith.constant 1 : index
    %c0_29 = arith.constant 0 : index
    %c0_30 = arith.constant 0 : index
    %50 = vector.load %arg5[%c1_28, %c0_29, %c0_30] : memref<2x48x48xf32, #tpu.memory_space<vmem>>, vector<1x48x48xf32>
    %51 = vector.shape_cast %50 : vector<1x48x48xf32> to vector<48x48xf32>
    %c1_31 = arith.constant 1 : index
    %c0_32 = arith.constant 0 : index
    %c0_33 = arith.constant 0 : index
    %52 = vector.load %arg6[%c1_31, %c0_32, %c0_33] : memref<2x32x48xf32, #tpu.memory_space<vmem>>, vector<1x32x48xf32>
    %53 = vector.shape_cast %52 : vector<1x32x48xf32> to vector<32x48xf32>
    %c1_34 = arith.constant 1 : index
    %c0_35 = arith.constant 0 : index
    %c0_36 = arith.constant 0 : index
    %54 = vector.load %arg7[%c1_34, %c0_35, %c0_36] : memref<2x32x1xf32, #tpu.memory_space<vmem>>, vector<1x32x1xf32>
    %55 = vector.shape_cast %54 : vector<1x32x1xf32> to vector<32x1xf32>
    %c1_37 = arith.constant 1 : index
    %c0_38 = arith.constant 0 : index
    %c0_39 = arith.constant 0 : index
    %56 = vector.load %arg8[%c1_37, %c0_38, %c0_39] : memref<2x16x32xf32, #tpu.memory_space<vmem>>, vector<1x16x32xf32>
    %57 = vector.shape_cast %56 : vector<1x16x32xf32> to vector<16x32xf32>
    %c1_40 = arith.constant 1 : index
    %c0_41 = arith.constant 0 : index
    %c0_42 = arith.constant 0 : index
    %58 = vector.load %arg9[%c1_40, %c0_41, %c0_42] : memref<2x16x1xf32, #tpu.memory_space<vmem>>, vector<1x16x1xf32>
    %59 = vector.shape_cast %58 : vector<1x16x1xf32> to vector<16x1xf32>
    %cst_43 = arith.constant dense<0.000000e+00> : vector<48x64xf32>
    %60 = tpu.matmul %49, %47, %cst_43 {dimension_numbers = #tpu.dot_dimension_numbers<[1], [0], [0], [1], [0, 0, 1, 1], [], []>} : vector<48x48xf32>, vector<48x64xf32>, vector<48x64xf32> -> vector<48x64xf32>
    %cst_44 = arith.constant dense<0.000000e+00> : vector<48x64xf32>
    %61 = tpu.matmul %51, %47, %cst_44 {dimension_numbers = #tpu.dot_dimension_numbers<[1], [0], [0], [1], [0, 0, 1, 1], [], []>} : vector<48x48xf32>, vector<48x64xf32>, vector<48x64xf32> -> vector<48x64xf32>
    %62 = vector.extract_strided_slice %60 {offsets = [0, 0], sizes = [16, 64], strides = [1, 1]} : vector<48x64xf32> to vector<16x64xf32>
    %63 = vector.extract_strided_slice %60 {offsets = [0, 0], sizes = [16, 64], strides = [1, 1]} : vector<48x64xf32> to vector<16x64xf32>
    %64 = arith.mulf %62, %63 : vector<16x64xf32>
    %65 = vector.extract_strided_slice %60 {offsets = [16, 0], sizes = [16, 64], strides = [1, 1]} : vector<48x64xf32> to vector<16x64xf32>
    %66 = vector.extract_strided_slice %60 {offsets = [16, 0], sizes = [16, 64], strides = [1, 1]} : vector<48x64xf32> to vector<16x64xf32>
    %67 = arith.mulf %65, %66 : vector<16x64xf32>
    %68 = arith.addf %64, %67 : vector<16x64xf32>
    %69 = vector.extract_strided_slice %60 {offsets = [32, 0], sizes = [16, 64], strides = [1, 1]} : vector<48x64xf32> to vector<16x64xf32>
    %70 = vector.extract_strided_slice %60 {offsets = [32, 0], sizes = [16, 64], strides = [1, 1]} : vector<48x64xf32> to vector<16x64xf32>
    %71 = arith.mulf %69, %70 : vector<16x64xf32>
    %72 = arith.addf %68, %71 : vector<16x64xf32>
    %73 = math.sqrt %72 : vector<16x64xf32>
    %74 = tpu.concatenate %37, %73 in 0 : vector<32x64xf32>, vector<16x64xf32> -> vector<48x64xf32>
    %cst_45 = arith.constant dense<0.000000e+00> : vector<32x64xf32>
    %75 = tpu.matmul %53, %74, %cst_45 {dimension_numbers = #tpu.dot_dimension_numbers<[1], [0], [0], [1], [0, 0, 1, 1], [], []>} : vector<32x48xf32>, vector<48x64xf32>, vector<32x64xf32> -> vector<32x64xf32>
    %76 = vector.broadcast %55 : vector<32x1xf32> to vector<32x64xf32>
    %77 = arith.addf %75, %76 : vector<32x64xf32>
    %78 = arith.negf %77 : vector<32x64xf32>
    %79 = math.exp %78 : vector<32x64xf32>
    %cst_46 = arith.constant 1.000000e+00 : f32
    %80 = vector.broadcast %cst_46 : f32 to vector<32x64xf32>
    %81 = arith.addf %80, %79 : vector<32x64xf32>
    %82 = arith.divf %80, %81 : vector<32x64xf32>
    %83 = arith.mulf %77, %82 : vector<32x64xf32>
    %cst_47 = arith.constant dense<0.000000e+00> : vector<16x64xf32>
    %84 = tpu.matmul %57, %83, %cst_47 {dimension_numbers = #tpu.dot_dimension_numbers<[1], [0], [0], [1], [0, 0, 1, 1], [], []>} : vector<16x32xf32>, vector<32x64xf32>, vector<16x64xf32> -> vector<16x64xf32>
    %85 = vector.broadcast %59 : vector<16x1xf32> to vector<16x64xf32>
    %86 = arith.addf %84, %85 : vector<16x64xf32>
    %87 = arith.negf %86 : vector<16x64xf32>
    %88 = math.exp %87 : vector<16x64xf32>
    %cst_48 = arith.constant 1.000000e+00 : f32
    %89 = vector.broadcast %cst_48 : f32 to vector<16x64xf32>
    %90 = arith.addf %89, %88 : vector<16x64xf32>
    %91 = arith.divf %89, %90 : vector<16x64xf32>
    %92 = tpu.concatenate %91, %91, %91 in 0 : vector<16x64xf32>, vector<16x64xf32>, vector<16x64xf32> -> vector<48x64xf32>
    %93 = arith.mulf %61, %92 : vector<48x64xf32>
    %c0_49 = arith.constant 0 : index
    %c0_50 = arith.constant 0 : index
    %94 = vector.load %arg10[%c0_49, %c0_50] : memref<48x48xf32, #tpu.memory_space<vmem>>, vector<48x48xf32>
    %c0_51 = arith.constant 0 : index
    %c0_52 = arith.constant 0 : index
    %95 = vector.load %arg11[%c0_51, %c0_52] : memref<3x48xf32, #tpu.memory_space<vmem>>, vector<3x48xf32>
    %c0_53 = arith.constant 0 : index
    %c0_54 = arith.constant 0 : index
    %96 = vector.load %arg12[%c0_53, %c0_54] : memref<32x48xf32, #tpu.memory_space<vmem>>, vector<32x48xf32>
    %c0_55 = arith.constant 0 : index
    %c0_56 = arith.constant 0 : index
    %97 = vector.load %arg13[%c0_55, %c0_56] : memref<32x1xf32, #tpu.memory_space<vmem>>, vector<32x1xf32>
    %c0_57 = arith.constant 0 : index
    %c0_58 = arith.constant 0 : index
    %98 = vector.load %arg14[%c0_57, %c0_58] : memref<1x32xf32, #tpu.memory_space<vmem>>, vector<1x32xf32>
    %c0_59 = arith.constant 0 : index
    %c0_60 = arith.constant 0 : index
    %99 = vector.load %arg15[%c0_59, %c0_60] : memref<1x1xf32, #tpu.memory_space<vmem>>, vector<1x1xf32>
    %cst_61 = arith.constant dense<0.000000e+00> : vector<48x64xf32>
    %100 = tpu.matmul %94, %93, %cst_61 {dimension_numbers = #tpu.dot_dimension_numbers<[1], [0], [0], [1], [0, 0, 1, 1], [], []>} : vector<48x48xf32>, vector<48x64xf32>, vector<48x64xf32> -> vector<48x64xf32>
    %cst_62 = arith.constant dense<0.000000e+00> : vector<3x64xf32>
    %101 = tpu.matmul %95, %93, %cst_62 {dimension_numbers = #tpu.dot_dimension_numbers<[1], [0], [0], [1], [0, 0, 1, 1], [], []>} : vector<3x48xf32>, vector<48x64xf32>, vector<3x64xf32> -> vector<3x64xf32>
    %102 = vector.extract_strided_slice %100 {offsets = [0, 0], sizes = [16, 64], strides = [1, 1]} : vector<48x64xf32> to vector<16x64xf32>
    %103 = vector.extract_strided_slice %100 {offsets = [0, 0], sizes = [16, 64], strides = [1, 1]} : vector<48x64xf32> to vector<16x64xf32>
    %104 = arith.mulf %102, %103 : vector<16x64xf32>
    %105 = vector.extract_strided_slice %100 {offsets = [16, 0], sizes = [16, 64], strides = [1, 1]} : vector<48x64xf32> to vector<16x64xf32>
    %106 = vector.extract_strided_slice %100 {offsets = [16, 0], sizes = [16, 64], strides = [1, 1]} : vector<48x64xf32> to vector<16x64xf32>
    %107 = arith.mulf %105, %106 : vector<16x64xf32>
    %108 = arith.addf %104, %107 : vector<16x64xf32>
    %109 = vector.extract_strided_slice %100 {offsets = [32, 0], sizes = [16, 64], strides = [1, 1]} : vector<48x64xf32> to vector<16x64xf32>
    %110 = vector.extract_strided_slice %100 {offsets = [32, 0], sizes = [16, 64], strides = [1, 1]} : vector<48x64xf32> to vector<16x64xf32>
    %111 = arith.mulf %109, %110 : vector<16x64xf32>
    %112 = arith.addf %108, %111 : vector<16x64xf32>
    %113 = math.sqrt %112 : vector<16x64xf32>
    %114 = tpu.concatenate %83, %113 in 0 : vector<32x64xf32>, vector<16x64xf32> -> vector<48x64xf32>
    %cst_63 = arith.constant dense<0.000000e+00> : vector<32x64xf32>
    %115 = tpu.matmul %96, %114, %cst_63 {dimension_numbers = #tpu.dot_dimension_numbers<[1], [0], [0], [1], [0, 0, 1, 1], [], []>} : vector<32x48xf32>, vector<48x64xf32>, vector<32x64xf32> -> vector<32x64xf32>
    %116 = vector.broadcast %97 : vector<32x1xf32> to vector<32x64xf32>
    %117 = arith.addf %115, %116 : vector<32x64xf32>
    %118 = arith.negf %117 : vector<32x64xf32>
    %119 = math.exp %118 : vector<32x64xf32>
    %cst_64 = arith.constant 1.000000e+00 : f32
    %120 = vector.broadcast %cst_64 : f32 to vector<32x64xf32>
    %121 = arith.addf %120, %119 : vector<32x64xf32>
    %122 = arith.divf %120, %121 : vector<32x64xf32>
    %123 = arith.mulf %117, %122 : vector<32x64xf32>
    %cst_65 = arith.constant dense<0.000000e+00> : vector<1x64xf32>
    %124 = tpu.matmul %98, %123, %cst_65 {dimension_numbers = #tpu.dot_dimension_numbers<[1], [0], [0], [1], [0, 0, 1, 1], [], []>} : vector<1x32xf32>, vector<32x64xf32>, vector<1x64xf32> -> vector<1x64xf32>
    %125 = vector.broadcast %99 : vector<1x1xf32> to vector<1x64xf32>
    %126 = arith.addf %124, %125 : vector<1x64xf32>
    %127 = vector.broadcast %126 : vector<1x64xf32> to vector<3x64xf32>
    %128 = arith.mulf %101, %127 : vector<3x64xf32>
    %c0_66 = arith.constant 0 : index
    %c0_67 = arith.constant 0 : index
    %129 = vector.load %arg2[%c0_66, %c0_67] : memref<3x64xf32, #tpu.memory_space<vmem>>, vector<3x64xf32>
    %130 = arith.addf %129, %128 : vector<3x64xf32>
    %c0_68 = arith.constant 0 : index
    %c0_69 = arith.constant 0 : index
    %131 = vector.load %arg16[%c0_68, %c0_69] : memref<3x64xf32, #tpu.memory_space<vmem>>, vector<3x64xf32>
    tpu.vector_store %arg16[%c0_68, %c0_69], %130 {strides = array<i32>} : memref<3x64xf32, #tpu.memory_space<vmem>>, vector<3x64xf32>,
    return
  }
  func.func @transform_0(%arg0: i32) -> (i32, i32) {
    %c0_i32 = arith.constant 0 : i32
    %c0_i32_0 = arith.constant 0 : i32
    return %c0_i32, %arg0 : i32, i32
  }
  func.func @transform_1(%arg0: i32) -> (i32, i32) {
    %c0_i32 = arith.constant 0 : i32
    %c0_i32_0 = arith.constant 0 : i32
    return %c0_i32, %arg0 : i32, i32
  }
  func.func @transform_2(%arg0: i32) -> (i32, i32) {
    %c0_i32 = arith.constant 0 : i32
    %c0_i32_0 = arith.constant 0 : i32
    return %c0_i32, %arg0 : i32, i32
  }
  func.func @transform_3(%arg0: i32) -> (i32, i32, i32) {
    %c0_i32 = arith.constant 0 : i32
    %c0_i32_0 = arith.constant 0 : i32
    %c0_i32_1 = arith.constant 0 : i32
    %c0_i32_2 = arith.constant 0 : i32
    return %c0_i32, %c0_i32_0, %c0_i32_1 : i32, i32, i32
  }
  func.func @transform_4(%arg0: i32) -> (i32, i32, i32) {
    %c0_i32 = arith.constant 0 : i32
    %c0_i32_0 = arith.constant 0 : i32
    %c0_i32_1 = arith.constant 0 : i32
    %c0_i32_2 = arith.constant 0 : i32
    return %c0_i32, %c0_i32_0, %c0_i32_1 : i32, i32, i32
  }
  func.func @transform_5(%arg0: i32) -> (i32, i32, i32) {
    %c0_i32 = arith.constant 0 : i32
    %c0_i32_0 = arith.constant 0 : i32
    %c0_i32_1 = arith.constant 0 : i32
    %c0_i32_2 = arith.constant 0 : i32
    return %c0_i32, %c0_i32_0, %c0_i32_1 : i32, i32, i32
  }
  func.func @transform_6(%arg0: i32) -> (i32, i32, i32) {
    %c0_i32 = arith.constant 0 : i32
    %c0_i32_0 = arith.constant 0 : i32
    %c0_i32_1 = arith.constant 0 : i32
    %c0_i32_2 = arith.constant 0 : i32
    return %c0_i32, %c0_i32_0, %c0_i32_1 : i32, i32, i32
  }
  func.func @transform_7(%arg0: i32) -> (i32, i32, i32) {
    %c0_i32 = arith.constant 0 : i32
    %c0_i32_0 = arith.constant 0 : i32
    %c0_i32_1 = arith.constant 0 : i32
    %c0_i32_2 = arith.constant 0 : i32
    return %c0_i32, %c0_i32_0, %c0_i32_1 : i32, i32, i32
  }
  func.func @transform_8(%arg0: i32) -> (i32, i32, i32) {
    %c0_i32 = arith.constant 0 : i32
    %c0_i32_0 = arith.constant 0 : i32
    %c0_i32_1 = arith.constant 0 : i32
    %c0_i32_2 = arith.constant 0 : i32
    return %c0_i32, %c0_i32_0, %c0_i32_1 : i32, i32, i32
  }
  func.func @transform_9(%arg0: i32) -> (i32, i32) {
    %c0_i32 = arith.constant 0 : i32
    %c0_i32_0 = arith.constant 0 : i32
    %c0_i32_1 = arith.constant 0 : i32
    return %c0_i32, %c0_i32_0 : i32, i32
  }
  func.func @transform_10(%arg0: i32) -> (i32, i32) {
    %c0_i32 = arith.constant 0 : i32
    %c0_i32_0 = arith.constant 0 : i32
    %c0_i32_1 = arith.constant 0 : i32
    return %c0_i32, %c0_i32_0 : i32, i32
  }
  func.func @transform_11(%arg0: i32) -> (i32, i32) {
    %c0_i32 = arith.constant 0 : i32
    %c0_i32_0 = arith.constant 0 : i32
    %c0_i32_1 = arith.constant 0 : i32
    return %c0_i32, %c0_i32_0 : i32, i32
  }
  func.func @transform_12(%arg0: i32) -> (i32, i32) {
    %c0_i32 = arith.constant 0 : i32
    %c0_i32_0 = arith.constant 0 : i32
    %c0_i32_1 = arith.constant 0 : i32
    return %c0_i32, %c0_i32_0 : i32, i32
  }
  func.func @transform_13(%arg0: i32) -> (i32, i32) {
    %c0_i32 = arith.constant 0 : i32
    %c0_i32_0 = arith.constant 0 : i32
    %c0_i32_1 = arith.constant 0 : i32
    return %c0_i32, %c0_i32_0 : i32, i32
  }
  func.func @transform_14(%arg0: i32) -> (i32, i32) {
    %c0_i32 = arith.constant 0 : i32
    %c0_i32_0 = arith.constant 0 : i32
    %c0_i32_1 = arith.constant 0 : i32
    return %c0_i32, %c0_i32_0 : i32, i32
  }
  func.func @transform_15(%arg0: i32) -> (i32, i32) {
    %c0_i32 = arith.constant 0 : i32
    %c0_i32_0 = arith.constant 0 : i32
    return %c0_i32, %arg0 : i32, i32
  }
}

</mosaic_0001>

<bundles_post_ra>
// kernel: _lambda_.1
= control target key start
LH: loop header
LB: loop body
LE: loop exit
PB: predicated region body
PF: predicated region fallthrough
CT: control target
= control target key end

     0   :  { %s2637_s0 = inlined_call_operand.vmem [shape: f32[32,64], index: 0, kind: input, shape index: {}]   ;;  %s2638_s1 = inlined_call_operand.vmem [shape: f32[3,64], index: 1, kind: input, shape index: {}]   ;;  %s2639_s2 = inlined_call_operand.vmem [shape: f32[48,64], index: 2, kind: input, shape index: {}]   ;;  %s2640_s3 = inlined_call_operand.vmem [shape: f32[2,48,48], index: 3, kind: input, shape index: {}]   ;;  %s2641_s4 = inlined_call_operand.vmem [shape: f32[2,48,48], index: 4, kind: input, shape index: {}]   ;;  %s2642_s5 = inlined_call_operand.vmem [shape: f32[2,32,48], index: 5, kind: input, shape index: {}]   ;;  %s2643_s6 = inlined_call_operand.vmem [shape: f32[2,32,1], index: 6, kind: input, shape index: {}]   ;;  %s2644_s7 = inlined_call_operand.vmem [shape: f32[2,16,32], index: 7, kind: input, shape index: {}]   ;;  %s2645_s8 = inlined_call_operand.vmem [shape: f32[2,16,1], index: 8, kind: input, shape index: {}]   ;;  %s2646_s9 = inlined_call_operand.vmem [shape: f32[48,48], index: 9, kind: input, shape index: {}]   ;;  %s2647_s10 = inlined_call_operand.vmem [shape: f32[3,48], index: 10, kind: input, shape index: {}]   ;;  %s2648_s11 = inlined_call_operand.vmem [shape: f32[32,48], index: 11, kind: input, shape index: {}]   ;;  %s2649_s12 = inlined_call_operand.vmem [shape: f32[32,1], index: 12, kind: input, shape index: {}]   ;;  %s2650_s13 = inlined_call_operand.vmem [shape: f32[1,32], index: 13, kind: input, shape index: {}]   ;;  %s2651_s14 = inlined_call_operand.<no memory space> [shape: f32[1,1], index: 14, kind: input, shape index: {}]   ;;  %s2652_s15 = inlined_call_operand.hbm [shape: f32[3,64], index: 15, kind: output, shape index: {}]  }
   0x1   :  { %v20_v0 = vstv %s2651_s14 }
   0x2   :  { %21 = vst [vmem:[#allocation2] sm:$0x1] %v20_v0 }
   0x3   :  { %v57_v1 = vld [vmem:[%s2639_s2] sm:$0xff]  ;;  %v58_v2 = vld [vmem:[%s2639_s2 + $0x8] sm:$0xff]  ;;  %v59_v3 = vld [vmem:[%s2639_s2 + $0x10] sm:$0xff]  ;;  %vm87_vm0 = vcmask 392192  }
   0x4   :  { %v2013_v4 = vpack.c.bf16 %v58_v2, %v57_v1  ;;  %v60_v5 = vld [vmem:[%s2639_s2 + $0x18] sm:$0xff]  ;;  %v61_v7 = vld [vmem:[%s2639_s2 + $0x20] sm:$0xff]  ;;  %v62_v8 = vld [vmem:[%s2639_s2 + $0x28] sm:$0xff] }
   0x5   :  { %v2017_v6 = vpack.c.bf16 %v60_v5, %v59_v3  ;;  %v63_v9 = vld [vmem:[%s2640_s3] sm:$0xff] }
   0x6   :  { %2014 = vmatprep.subr.bf16.mxu0 %v2013_v4  ;;  %1818 = vmatprep.mubr.msk.f32.mxu0 %vm87_vm0, %v63_v9 }
   0x7   :  { %2016 = vmatpush3.bf16.msra.mxu0 %v2013_v4  ;;  %2026 = vmatprep.subr.bf16.mxu1 %v2013_v4 }
   0x8   :  { %22 = vsyncpa [#allocation4], 0  ;;  %2018 = vmatprep.subr.bf16.mxu0 %v2017_v6  ;;  %v2021_v10 = vpack.c.bf16 %v62_v8, %v61_v7  ;;  %2028 = vmatpush3.bf16.msra.mxu1 %v2013_v4  ;;  %v64_v11 = vld [vmem:[%s2640_s3 + $0x8] sm:$0xff]  ;;  %v65_v12 = vld [vmem:[%s2640_s3 + $0x10] sm:$0xff]  ;;  %v2247_v25 = vmov 0   ;;  %vm493_vm5 = vcmask 261120  }
   0x9   :  { %2030 = vmatprep.subr.bf16.mxu1 %v2017_v6  ;;  %v66_v13 = vld [vmem:[%s2640_s3 + $0x18] sm:$0xff]  ;;  %v67_v14 = vld [vmem:[%s2640_s3 + $0x20] sm:$0xff]  ;;  %v68_v15 = vld [vmem:[%s2640_s3 + $0x28] sm:$0xff]  ;;  %2145 = vset.pattern.permute.xlu0 %v2247_v25  ;;  %vm2249_vm14 = vmmov 0   ;;  %vm1588_vm15 = vcmask 518144  }
   0xa   :  { %v53_v16 = vld [vmem:[%s2637_s0] sm:$0xff]  ;;  %v54_v17 = vld [vmem:[%s2637_s0 + $0x8] sm:$0xff]  ;;  %v55_v18 = vld [vmem:[%s2637_s0 + $0x10] sm:$0xff]  ;;  %2146 = vset.pattern.permute.xlu1 %v2247_v25 }
   0xb   :  { %2020 = vmatpush3.bf16.msra.mxu0 %v2017_v6  ;;  %v2037_v19 = vpack.c.bf16 %v54_v17, %v53_v16  ;;  %v56_v20 = vld [vmem:[%s2637_s0 + $0x18] sm:$0xff]  ;;  %v75_v22 = vld [vmem:[%s2642_s5] sm:$0xff]  ;;  %v81_v24 = vld [vmem:[%s2643_s6 + $0x10] sm:$0xff] }
   0xc   :  { %2022 = vmatprep.subr.bf16.mxu0 %v2021_v10  ;;  %2032 = vmatpush3.bf16.msra.mxu1 %v2017_v6  ;;  %v2041_v21 = vpack.c.bf16 %v56_v20, %v55_v18  ;;  %v79_v23 = vld [vmem:[%s2643_s6] sm:$0xff]  ;;  %v80_v26 = vld [vmem:[%s2643_s6 + $0x8] sm:$0xff]  ;;  %v82_v27 = vld [vmem:[%s2643_s6 + $0x18] sm:$0xff] }
   0xd   :  { %2034 = vmatprep.subr.bf16.mxu1 %v2021_v10  ;;  %340 = vperm.xlu0 %2145, %v79_v23   ;;  %v85_v28 = vld [vmem:[%s2645_s8] sm:$0xff]  ;;  %v86_v29 = vld [vmem:[%s2645_s8 + $0x8] sm:$0xff]  ;;  %v1646_v32 = vld [vmem:[%s2643_s6 + $0x30] sm:$0xff] }
   0xe   :  { %350 = vperm.xlu1 %2146, %v81_v24   ;;  %v1644_v30 = vld [vmem:[%s2643_s6 + $0x20] sm:$0xff]  ;;  %v1645_v31 = vld [vmem:[%s2643_s6 + $0x28] sm:$0xff]  ;;  %v1647_v33 = vld [vmem:[%s2643_s6 + $0x38] sm:$0xff] }
   0xf   :  { %2024 = vmatpush3.bf16.msra.mxu0 %v2021_v10  ;;  %v1650_v34 = vld [vmem:[%s2645_s8 + $0x10] sm:$0xff]  ;;  %v1651_v35 = vld [vmem:[%s2645_s8 + $0x18] sm:$0xff]  ;;  %v1138_v36 = vld [vmem:[%s2649_s12] sm:$0xff] }
  0x10   :  { %2036 = vmatpush3.bf16.msra.mxu1 %v2021_v10  ;;  %2038 = vmatprep.subr.bf16.mxu0 %v2037_v19  ;;  %v1139_v37 = vld [vmem:[%s2649_s12 + $0x8] sm:$0xff]  ;;  %v1140_v38 = vld [vmem:[%s2649_s12 + $0x10] sm:$0xff]  ;;  %v1141_v39 = vld [vmem:[%s2649_s12 + $0x18] sm:$0xff] }
  0x11   :  { %345 = vperm.xlu0 %2145, %v80_v26   ;;  %v1143_v40 = vld [vmem:[#allocation2] sm:$0x1]  ;;  %v76_v4 = vld [vmem:[%s2642_s5 + $0x8] sm:$0xff]  ;;  %v77_v5 = vld [vmem:[%s2642_s5 + $0x10] sm:$0xff] }
  0x12   :  { %1819 = vmatmul.mubr.msk.f32.vlgmr.msra.gmra.mrb[0].mxu0 %vm87_vm0, %v64_v11  ;;  %355 = vperm.xlu1 %2146, %v82_v27   ;;  %v78_v6 = vld [vmem:[%s2642_s5 + $0x18] sm:$0xff]  ;;  %v69_v7 = vld [vmem:[%s2641_s4] sm:$0xff]  ;;  %v70_v8 = vld [vmem:[%s2641_s4 + $0x8] sm:$0xff] }
  0x13   :  { %1821 = vmatprep.mubr.msk.f32.mxu0 %vm87_vm0, %v65_v12  ;;  %2040 = vmatpush3.bf16.msra.mxu0 %v2037_v19  ;;  %v71_v9 = vld [vmem:[%s2641_s4 + $0x10] sm:$0xff]  ;;  %v72_v10 = vld [vmem:[%s2641_s4 + $0x18] sm:$0xff]  ;;  %v73_v11 = vld [vmem:[%s2641_s4 + $0x20] sm:$0xff] }
  0x14   :  { %2042 = vmatprep.subr.bf16.mxu0 %v2041_v21  ;;  %1839 = vmatprep.mubr.msk.f32.mxu1 %vm87_vm0, %v69_v7  ;;  %v74_v12 = vld [vmem:[%s2641_s4 + $0x28] sm:$0xff] }
  0x15   :  { %485 = vperm.xlu0 %2145, %v85_v28   ;;  %1840 = vmatmul.mubr.msk.f32.vlgmr.msra.gmra.mrb[0].mxu1 %vm87_vm0, %v70_v8 }
  0x16   :  { %1822 = vmatmul.mubr.msk.f32.gmra.mrb[2].mxu0 %vm87_vm0, %v66_v13  ;;  %490 = vperm.xlu1 %2146, %v86_v29   ;;  %v83_v13 = vld [vmem:[%s2644_s7] sm:$0xff] }
  0x17   :  { %1824 = vmatprep.mubr.msk.f32.mxu0 %vm87_vm0, %v67_v14  ;;  %2044 = vmatpush3.bf16.msra.mxu0 %v2041_v21 }
  0x18   :  { %1842 = vmatprep.mubr.msk.f32.mxu1 %vm87_vm0, %v71_v9 }
  0x19   :  { %875 = vperm.xlu0 %2145, %v1644_v30   ;;  %1843 = vmatmul.mubr.msk.f32.gmra.mrb[2].mxu1 %vm87_vm0, %v72_v10 }
  0x1a   :  { %1825 = vmatmul.mubr.msk.f32.gmra.mrb[4].mxu0 %vm87_vm0, %v68_v15  ;;  %880 = vperm.xlu1 %2146, %v1645_v31  }
  0x1b   :  { %1860 = vmatprep.mubr.msk.f32.mxu0 %vm87_vm0, %v75_v22  ;;  %1845 = vmatprep.mubr.msk.f32.mxu1 %vm87_vm0, %v73_v11 }
  0x1d   :  { %885 = vperm.xlu0 %2145, %v1646_v32   ;;  %1846 = vmatmul.mubr.msk.f32.gmra.mrb[4].mxu1 %vm87_vm0, %v74_v12 }
  0x1e   :  { %890 = vperm.xlu1 %2146, %v1647_v33   ;;  %1874 = vmatprep.mubr.msk.f32.mxu1 %vm493_vm5, %v83_v13 }
  0x21   :  { %1020 = vperm.xlu0 %2145, %v1650_v34  }
  0x22   :  { %1025 = vperm.xlu1 %2146, %v1651_v35  }
  0x25   :  { %1356 = vperm.xlu0 %2145, %v1138_v36  }
  0x26   :  { %1361 = vperm.xlu1 %2146, %v1139_v37  }
  0x29   :  { %1366 = vperm.xlu0 %2145, %v1140_v38  }
  0x2a   :  { %1371 = vperm.xlu1 %2146, %v1141_v39  }
  0x2d   :  { %1501 = vperm.xlu0 %2145, %v1143_v40  }
  0x8c   :  { %v341_v14 = vpop.permute.xlu0 %340 }
  0x8d   :  { %v351_v15 = vpop.permute.xlu1 %350 }
  0x90   :  { %v346_v16 = vpop.permute.xlu0 %345 }
  0x91   :  { %v356_v22 = vpop.permute.xlu1 %355 }
  0xe5   :  { %v1820_v41 = vpop.f32.mrb[0].mxu0 }
  0xe6   :  { %v172_v42 = vpop.f32.mrb[1].mxu0  ;;  %v315_v44 = vmul.f32 %v1820_v41, %v1820_v41 }
  0xe7   :  { %v314_v47 = vmul.f32 %v172_v42, %v172_v42 }
  0xe9   :  { %v1823_v43 = vpop.f32.mrb[2].mxu0 }
  0xea   :  { %v317_v45 = vmul.f32 %v1823_v43, %v1823_v43  ;;  %v182_v46 = vpop.f32.mrb[3].mxu0 }
  0xeb   :  { %v316_v48 = vmul.f32 %v182_v46, %v182_v46 }
  0xec   :  { %v319_v49 = vadd.f32 %v317_v45, %v315_v44 }
  0xed   :  { %v318_v50 = vadd.f32 %v316_v48, %v314_v47  ;;  %v1826_v51 = vpop.f32.mrb[4].mxu0  ;;  %v84_v48 = vld [vmem:[%s2644_s7 + $0x8] sm:$0xff] }
  0xee   :  { %v321_v52 = vmul.f32 %v1826_v51, %v1826_v51  ;;  %v192_v53 = vpop.f32.mrb[5].mxu0 }
  0xef   :  { %v320_v54 = vmul.f32 %v192_v53, %v192_v53 }
  0xf0   :  { %v323_v55 = vadd.f32 %v321_v52, %v319_v49  ;;  %v1841_v49 = vpop.f32.mrb[0].mxu1 }
  0xf1   :  { %v322_v56 = vadd.f32 %v320_v54, %v318_v50  ;;  %v285_v50 = vpop.f32.mrb[1].mxu1 }
  0xf2   :  { %2147 = vrsqrt.f32 %v323_v55  ;;  %vm333_vm1 = vcmp.eq.f32.partialorder %v323_v55, inf  ;;  %v336_v61 = vand.u32 2147483648, %v323_v55  ;;  %vm335_vm3 = vcmp.eq.f32.partialorder %v323_v55, 0.0  ;;  %v1844_v51 = vpop.f32.mrb[2].mxu1 }
  0xf3   :  { %2149 = vrsqrt.f32 %v322_v56  ;;  %vm326_vm2 = vcmp.eq.f32.partialorder %v322_v56, inf  ;;  %v329_v62 = vand.u32 2147483648, %v322_v56  ;;  %vm328_vm4 = vcmp.eq.f32.partialorder %v322_v56, 0.0  ;;  %v295_v52 = vpop.f32.mrb[3].mxu1 }
  0xf4   :  { %v1847_v53 = vpop.f32.mrb[4].mxu1 }
  0xf5   :  { %v305_v54 = vpop.f32.mrb[5].mxu1 }
  0xfc   :  { %v2148_v57 = vpop.eup %2147 }
  0xfd   :  { %v2150_v58 = vpop.eup %2149  ;;  %v332_v59 = vmul.f32 %v2148_v57, %v323_v55 }
  0xfe   :  { %v325_v60 = vmul.f32 %v2150_v58, %v322_v56  ;;  %v486_v58 = vpop.permute.xlu0 %485 }
  0xff   :  { %v334_v63 = vsel %vm333_vm1, %v323_v55, %v332_v59  ;;  %v1628_v55 = vld [vmem:[%s2640_s3 + $0x30] sm:$0xff] }
 0x100   :  { %v327_v0 = vsel %vm326_vm2, %v322_v56, %v325_v60  ;;  %v337_v1 = vsel %vm335_vm3, %v336_v61, %v334_v63  ;;  %v491_v56 = vpop.permute.xlu1 %490 }
 0x101   :  { %v330_v2 = vsel %vm328_vm4, %v329_v62, %v327_v0 }
 0x102   :  { %v2045_v3 = vpack.c.bf16 %v337_v1, %v330_v2 }
 0x104   :  { %2046 = vmatprep.subr.bf16.mxu0 %v2045_v3 }
 0x105   :  { %2048 = vmatpush3.bf16.msra.mxu0 %v2045_v3 }
 0x108   :  { %1861 = vmatmul.mubr.msk.f32.vlgmr.msra.gmra.mrb[6].mxu0 %vm87_vm0, %v76_v4 }
 0x109   :  { %1863 = vmatprep.mubr.msk.f32.mxu0 %vm87_vm0, %v77_v5 }
 0x10c   :  { %1864 = vmatmul.mubr.msk.f32.gmra.mrb[8].mxu0 %vm87_vm0, %v78_v6 }
 0x10d   :  { %1889 = vmatprep.mubr.msk.f32.mxu0 %vm87_vm0, %v1628_v55  ;;  %v1638_v55 = vld [vmem:[%s2641_s4 + $0x50] sm:$0xff] }
 0x1db   :  { %v1862_v17 = vpop.f32.mrb[6].mxu0 }
 0x1dc   :  { %v442_v18 = vadd.f32 %v1862_v17, %v346_v16  ;;  %v436_v19 = vpop.f32.mrb[7].mxu0  ;;  %v1630_v16 = vld [vmem:[%s2640_s3 + $0x40] sm:$0xff]  ;;  %v1631_v17 = vld [vmem:[%s2640_s3 + $0x48] sm:$0xff] }
 0x1dd   :  { %v437_v20 = vadd.f32 %v436_v19, %v341_v14  ;;  %v1633_v19 = vld [vmem:[%s2640_s3 + $0x58] sm:$0xff] }
 0x1de   :  { %v1621_v21 = vmul.f32 -1.442695, %v442_v18 }
 0x1df   :  { %v1620_v23 = vmul.f32 -1.442695, %v437_v20  ;;  %v1865_v24 = vpop.f32.mrb[8].mxu0 }
 0x1e0   :  { %2151 = vpow2.f32 %v1621_v21  ;;  %v452_v25 = vadd.f32 %v1865_v24, %v356_v22  ;;  %v446_v26 = vpop.f32.mrb[9].mxu0 }
 0x1e1   :  { %2153 = vpow2.f32 %v1620_v23  ;;  %v447_v27 = vadd.f32 %v446_v26, %v351_v15  ;;  %v1629_v15 = vld [vmem:[%s2640_s3 + $0x38] sm:$0xff] }
 0x1e2   :  { %v1623_v28 = vmul.f32 -1.442695, %v452_v25 }
 0x1e3   :  { %v1622_v29 = vmul.f32 -1.442695, %v447_v27 }
 0x1e4   :  { %2155 = vpow2.f32 %v1623_v28 }
 0x1e5   :  { %2157 = vpow2.f32 %v1622_v29 }
 0x1ea   :  { %v2152_v30 = vpop.eup %2151 }
 0x1eb   :  { %v2154_v31 = vpop.eup %2153  ;;  %v468_v32 = vadd.f32 1.0, %v2152_v30 }
 0x1ec   :  { %v467_v33 = vadd.f32 1.0, %v2154_v31 }
 0x1ed   :  { %2159 = vrcp.f32 %v468_v32 }
 0x1ee   :  { %v2156_v34 = vpop.eup %2155  ;;  %2161 = vrcp.f32 %v467_v33 }
 0x1ef   :  { %v2158_v35 = vpop.eup %2157  ;;  %v470_v36 = vadd.f32 1.0, %v2156_v34 }
 0x1f0   :  { %v469_v37 = vadd.f32 1.0, %v2158_v35 }
 0x1f1   :  { %2163 = vrcp.f32 %v470_v36 }
 0x1f2   :  { %2165 = vrcp.f32 %v469_v37 }
 0x1f7   :  { %v2160_v38 = vpop.eup %2159 }
 0x1f8   :  { %v2162_v39 = vpop.eup %2161  ;;  %v480_v40 = vmul.f32 %v2160_v38, %v442_v18  ;;  %v1632_v18 = vld [vmem:[%s2640_s3 + $0x50] sm:$0xff] }
 0x1f9   :  { %v479_v41 = vmul.f32 %v2162_v39, %v437_v20  ;;  %v1640_v20 = vld [vmem:[%s2642_s5 + $0x20] sm:$0xff] }
 0x1fb   :  { %v2164_v42 = vpop.eup %2163  ;;  %v2049_v43 = vpack.c.bf16 %v480_v40, %v479_v41 }
 0x1fc   :  { %v2166_v44 = vpop.eup %2165  ;;  %v482_v45 = vmul.f32 %v2164_v42, %v452_v25 }
 0x1fd   :  { %v481_v46 = vmul.f32 %v2166_v44, %v447_v27  ;;  %2050 = vmatprep.subr.bf16.mxu1 %v2049_v43 }
 0x1fe   :  { %2052 = vmatpush3.bf16.msra.mxu1 %v2049_v43 }
 0x1ff   :  { %v2053_v47 = vpack.c.bf16 %v482_v45, %v481_v46 }
 0x201   :  { %2054 = vmatprep.subr.bf16.mxu1 %v2053_v47 }
 0x202   :  { %2056 = vmatpush3.bf16.msra.mxu1 %v2053_v47 }
 0x205   :  { %1875 = vmatmul.mubr.msk.f32.vlgmr.msra.gmra.mrb[6].mxu1 %vm493_vm5, %v84_v48  ;;  %v1641_v48 = vld [vmem:[%s2642_s5 + $0x28] sm:$0xff] }
 0x2d8   :  { %v1876_v57 = vpop.f32.mrb[6].mxu1 }
 0x2d9   :  { %v572_v59 = vadd.f32 %v1876_v57, %v491_v56  ;;  %v566_v60 = vpop.f32.mrb[7].mxu1  ;;  %v1639_v56 = vld [vmem:[%s2641_s4 + $0x58] sm:$0xff]  ;;  %v1648_v57 = vld [vmem:[%s2644_s7 + $0x10] sm:$0xff] }
 0x2da   :  { %v567_v61 = vadd.f32 %v566_v60, %v486_v58  ;;  %v881_v58 = vpop.permute.xlu1 %880 }
 0x2db   :  { %v1627_v62 = vmul.f32 -1.442695, %v572_v59  ;;  %v876_v59 = vpop.permute.xlu0 %875 }
 0x2dc   :  { %v1626_v63 = vmul.f32 -1.442695, %v567_v61 }
 0x2dd   :  { %2167 = vpow2.f32 %v1627_v62 }
 0x2de   :  { %2169 = vpow2.f32 %v1626_v63 }
 0x2e7   :  { %v2168_v0 = vpop.eup %2167 }
 0x2e8   :  { %v2170_v1 = vpop.eup %2169  ;;  %v582_v2 = vadd.f32 1.0, %v2168_v0 }
 0x2e9   :  { %v581_v3 = vadd.f32 1.0, %v2170_v1  ;;  %v891_v1 = vpop.permute.xlu1 %890 }
 0x2ea   :  { %2171 = vrcp.f32 %v582_v2 }
 0x2eb   :  { %2173 = vrcp.f32 %v581_v3 }
 0x2f4   :  { %v2172_v4 = vpop.eup %2171 }
 0x2f5   :  { %v2174_v5 = vpop.eup %2173  ;;  %v588_v6 = vmul.f32 %v2172_v4, %v1841_v49  ;;  %v590_v7 = vmul.f32 %v2172_v4, %v1844_v51  ;;  %v592_v8 = vmul.f32 %v2172_v4, %v1847_v53  ;;  %v1642_v49 = vld [vmem:[%s2642_s5 + $0x30] sm:$0xff]  ;;  %v1636_v53 = vld [vmem:[%s2641_s4 + $0x40] sm:$0xff]  ;;  %v886_v4 = vpop.permute.xlu0 %885 }
 0x2f6   :  { %v587_v9 = vmul.f32 %v2174_v5, %v285_v50  ;;  %v589_v10 = vmul.f32 %v2174_v5, %v295_v52  ;;  %v591_v11 = vmul.f32 %v2174_v5, %v305_v54  ;;  %v1643_v50 = vld [vmem:[%s2642_s5 + $0x38] sm:$0xff]  ;;  %v1634_v51 = vld [vmem:[%s2641_s4 + $0x30] sm:$0xff]  ;;  %v1637_v54 = vld [vmem:[%s2641_s4 + $0x48] sm:$0xff] }
 0x2f7   :  { %1910 = vmatprep.mubr.msk.f32.mxu1 %vm87_vm0, %v1634_v51  ;;  %v1635_v52 = vld [vmem:[%s2641_s4 + $0x38] sm:$0xff]  ;;  %s2251_s4 = smov [#allocation3]  }
 0x2f8   :  { %v2057_v12 = vpack.c.bf16 %v588_v6, %v587_v9  ;;  %v2061_v13 = vpack.c.bf16 %v590_v7, %v589_v10  ;;  %v2065_v14 = vpack.c.bf16 %v592_v8, %v591_v11  ;;  %s1596_s24 = sshll.u32 %s2251_s4, 4  ;;  %s1597_s24 = int_to_ptr.vmem [resolvable:$true] %s1596_s24 }
 0x2f9   :  { %p2228_p1 = scmp.lt.s32.totalorder %s1597_s24, %s1597_s24 }
 0x2fa   :  { %2058 = vmatprep.subr.bf16.mxu0 %v2057_v12  ;;  %2070 = vmatprep.subr.bf16.mxu1 %v2057_v12 }
 0x2fb   :  { %2060 = vmatpush3.bf16.msra.mxu0 %v2057_v12  ;;  %2072 = vmatpush3.bf16.msra.mxu1 %v2057_v12 }
 0x2fc   :  { %2062 = vmatprep.subr.bf16.mxu0 %v2061_v13  ;;  %2074 = vmatprep.subr.bf16.mxu1 %v2061_v13 }
 0x2ff   :  { %2064 = vmatpush3.bf16.msra.mxu0 %v2061_v13  ;;  %2076 = vmatpush3.bf16.msra.mxu1 %v2061_v13 }
 0x300   :  { %2066 = vmatprep.subr.bf16.mxu0 %v2065_v14  ;;  %2078 = vmatprep.subr.bf16.mxu1 %v2065_v14 }
 0x303   :  { %2068 = vmatpush3.bf16.msra.mxu0 %v2065_v14  ;;  %2080 = vmatpush3.bf16.msra.mxu1 %v2065_v14 }
 0x304   :  { %2082 = vmatprep.subr.bf16.mxu0 %v2049_v43 }
 0x306   :  { %1890 = vmatmul.mubr.msk.f32.vlgmr.msra.gmra.mrb[10].mxu0 %vm87_vm0, %v1629_v15  ;;  %1911 = vmatmul.mubr.msk.f32.vlgmr.msra.gmra.mrb[8].mxu1 %vm87_vm0, %v1635_v52 }
 0x307   :  { %2084 = vmatpush3.bf16.msra.mxu0 %v2049_v43  ;;  %1892 = vmatprep.mubr.msk.f32.mxu0 %vm87_vm0, %v1630_v16 }
 0x308   :  { %2086 = vmatprep.subr.bf16.mxu0 %v2053_v47  ;;  %1913 = vmatprep.mubr.msk.f32.mxu1 %vm87_vm0, %v1636_v53 }
 0x30a   :  { %1893 = vmatmul.mubr.msk.f32.gmra.mrb[12].mxu0 %vm87_vm0, %v1631_v17  ;;  %1914 = vmatmul.mubr.msk.f32.gmra.mrb[10].mxu1 %vm87_vm0, %v1637_v54 }
 0x30b   :  { %2088 = vmatpush3.bf16.msra.mxu0 %v2053_v47  ;;  %1895 = vmatprep.mubr.msk.f32.mxu0 %vm87_vm0, %v1632_v18 }
 0x30c   :  { %1916 = vmatprep.mubr.msk.f32.mxu1 %vm87_vm0, %v1638_v55 }
 0x30e   :  { %1896 = vmatmul.mubr.msk.f32.gmra.mrb[14].mxu0 %vm87_vm0, %v1633_v19  ;;  %1917 = vmatmul.mubr.msk.f32.gmra.mrb[12].mxu1 %vm87_vm0, %v1639_v56 }
 0x30f   :  { %1931 = vmatprep.mubr.msk.f32.mxu0 %vm87_vm0, %v1640_v20  ;;  %1945 = vmatprep.mubr.msk.f32.mxu1 %vm493_vm5, %v1648_v57 }
 0x3d9   :  { %v1891_v21 = vpop.f32.mrb[10].mxu0 }
 0x3da   :  { %v707_v22 = vpop.f32.mrb[11].mxu0  ;;  %v850_v24 = vmul.f32 %v1891_v21, %v1891_v21 }
 0x3db   :  { %v849_v27 = vmul.f32 %v707_v22, %v707_v22 }
 0x3dd   :  { %v1894_v23 = vpop.f32.mrb[12].mxu0 }
 0x3de   :  { %v852_v25 = vmul.f32 %v1894_v23, %v1894_v23  ;;  %v717_v26 = vpop.f32.mrb[13].mxu0 }
 0x3df   :  { %v851_v28 = vmul.f32 %v717_v26, %v717_v26 }
 0x3e0   :  { %v854_v29 = vadd.f32 %v852_v25, %v850_v24 }
 0x3e1   :  { %v853_v30 = vadd.f32 %v851_v28, %v849_v27  ;;  %v1897_v31 = vpop.f32.mrb[14].mxu0  ;;  %v1649_v28 = vld [vmem:[%s2644_s7 + $0x18] sm:$0xff] }
 0x3e2   :  { %v856_v32 = vmul.f32 %v1897_v31, %v1897_v31  ;;  %v727_v33 = vpop.f32.mrb[15].mxu0 }
 0x3e3   :  { %v855_v34 = vmul.f32 %v727_v33, %v727_v33 }
 0x3e4   :  { %v858_v35 = vadd.f32 %v856_v32, %v854_v29  ;;  %v1912_v29 = vpop.f32.mrb[8].mxu1 }
 0x3e5   :  { %v857_v36 = vadd.f32 %v855_v34, %v853_v30  ;;  %v820_v30 = vpop.f32.mrb[9].mxu1 }
 0x3e6   :  { %2175 = vrsqrt.f32 %v858_v35  ;;  %vm868_vm6 = vcmp.eq.f32.partialorder %v858_v35, inf  ;;  %v871_v41 = vand.u32 2147483648, %v858_v35  ;;  %vm870_vm8 = vcmp.eq.f32.partialorder %v858_v35, 0.0  ;;  %v1915_v31 = vpop.f32.mrb[10].mxu1 }
 0x3e7   :  { %2177 = vrsqrt.f32 %v857_v36  ;;  %vm861_vm7 = vcmp.eq.f32.partialorder %v857_v36, inf  ;;  %v864_v42 = vand.u32 2147483648, %v857_v36  ;;  %vm863_vm9 = vcmp.eq.f32.partialorder %v857_v36, 0.0  ;;  %v830_v32 = vpop.f32.mrb[11].mxu1 }
 0x3e8   :  { %v1918_v33 = vpop.f32.mrb[12].mxu1 }
 0x3e9   :  { %v840_v34 = vpop.f32.mrb[13].mxu1 }
 0x3f0   :  { %v2176_v37 = vpop.eup %2175 }
 0x3f1   :  { %v2178_v38 = vpop.eup %2177  ;;  %v867_v39 = vmul.f32 %v2176_v37, %v858_v35  ;;  %v1026_v37 = vpop.permute.xlu1 %1025 }
 0x3f2   :  { %v860_v40 = vmul.f32 %v2178_v38, %v857_v36 }
 0x3f3   :  { %v869_v43 = vsel %vm868_vm6, %v858_v35, %v867_v39  ;;  %v2248_v35 = vmov 0.0|0.0   ;;  %v1021_v39 = vpop.permute.xlu0 %1020 }
 0x3f4   :  { %v862_v44 = vsel %vm861_vm7, %v857_v36, %v860_v40  ;;  %v872_v45 = vsel %vm870_vm8, %v871_v41, %v869_v43  ;;  %v1127_v36 = vld [vmem:[%s2646_s9] sm:$0xff] }
 0x3f5   :  { %v865_v46 = vsel %vm863_vm9, %v864_v42, %v862_v44 }
 0x3f6   :  { %v2089_v47 = vpack.c.bf16 %v872_v45, %v865_v46 }
 0x3f8   :  { %2090 = vmatprep.subr.bf16.mxu0 %v2089_v47 }
 0x3f9   :  { %2092 = vmatpush3.bf16.msra.mxu0 %v2089_v47 }
 0x3fc   :  { %1932 = vmatmul.mubr.msk.f32.vlgmr.msra.gmra.mrb[16].mxu0 %vm87_vm0, %v1641_v48 }
 0x3fd   :  { %1934 = vmatprep.mubr.msk.f32.mxu0 %vm87_vm0, %v1642_v49 }
 0x400   :  { %1935 = vmatmul.mubr.msk.f32.gmra.mrb[18].mxu0 %vm87_vm0, %v1643_v50 }
 0x401   :  { %1960 = vmatprep.mubr.msk.f32.mxu0 %vm87_vm0, %v1127_v36  ;;  %v1357_v36 = vpop.permute.xlu0 %1356 }
 0x4cf   :  { %v1933_v60 = vpop.f32.mrb[16].mxu0 }
 0x4d0   :  { %v977_v61 = vadd.f32 %v1933_v60, %v881_v58  ;;  %v971_v62 = vpop.f32.mrb[17].mxu0  ;;  %v1128_v60 = vld [vmem:[%s2646_s9 + $0x8] sm:$0xff] }
 0x4d1   :  { %v972_v63 = vadd.f32 %v971_v62, %v876_v59  ;;  %v1130_v62 = vld [vmem:[%s2646_s9 + $0x18] sm:$0xff] }
 0x4d2   :  { %v1669_v0 = vmul.f32 -1.442695, %v977_v61 }
 0x4d3   :  { %v1668_v2 = vmul.f32 -1.442695, %v972_v63  ;;  %v1936_v3 = vpop.f32.mrb[18].mxu0 }
 0x4d4   :  { %2179 = vpow2.f32 %v1669_v0  ;;  %v987_v5 = vadd.f32 %v1936_v3, %v891_v1  ;;  %v981_v6 = vpop.f32.mrb[19].mxu0  ;;  %v1132_v0 = vld [vmem:[%s2646_s9 + $0x28] sm:$0xff]  ;;  %v1134_v1 = vld [vmem:[%s2648_s11] sm:$0xff] }
 0x4d5   :  { %2181 = vpow2.f32 %v1668_v2  ;;  %v982_v7 = vadd.f32 %v981_v6, %v886_v4 }
 0x4d6   :  { %v1671_v8 = vmul.f32 -1.442695, %v987_v5 }
 0x4d7   :  { %v1670_v9 = vmul.f32 -1.442695, %v982_v7 }
 0x4d8   :  { %2183 = vpow2.f32 %v1671_v8 }
 0x4d9   :  { %2185 = vpow2.f32 %v1670_v9 }
 0x4de   :  { %v2180_v10 = vpop.eup %2179 }
 0x4df   :  { %v2182_v11 = vpop.eup %2181  ;;  %v1003_v12 = vadd.f32 1.0, %v2180_v10 }
 0x4e0   :  { %v1002_v13 = vadd.f32 1.0, %v2182_v11 }
 0x4e1   :  { %2187 = vrcp.f32 %v1003_v12 }
 0x4e2   :  { %v2184_v14 = vpop.eup %2183  ;;  %2189 = vrcp.f32 %v1002_v13 }
 0x4e3   :  { %v2186_v15 = vpop.eup %2185  ;;  %v1005_v16 = vadd.f32 1.0, %v2184_v14 }
 0x4e4   :  { %v1004_v17 = vadd.f32 1.0, %v2186_v15 }
 0x4e5   :  { %2191 = vrcp.f32 %v1005_v16 }
 0x4e6   :  { %2193 = vrcp.f32 %v1004_v17 }
 0x4eb   :  { %v2188_v18 = vpop.eup %2187 }
 0x4ec   :  { %v2190_v19 = vpop.eup %2189  ;;  %v1015_v20 = vmul.f32 %v2188_v18, %v977_v61  ;;  %v1129_v61 = vld [vmem:[%s2646_s9 + $0x10] sm:$0xff] }
 0x4ed   :  { %v1014_v21 = vmul.f32 %v2190_v19, %v972_v63  ;;  %v1131_v63 = vld [vmem:[%s2646_s9 + $0x20] sm:$0xff] }
 0x4ef   :  { %v2192_v22 = vpop.eup %2191  ;;  %v2553_v23 = vpack.c.bf16 %v1015_v20, %v1014_v21 }
 0x4f0   :  { %v2194_v24 = vpop.eup %2193  ;;  %v1017_v25 = vmul.f32 %v2192_v22, %v987_v5 }
 0x4f1   :  { %v1016_v26 = vmul.f32 %v2194_v24, %v982_v7  ;;  %2094 = vmatprep.subr.bf16.mxu1 %v2553_v23 }
 0x4f2   :  { %2096 = vmatpush3.bf16.msra.mxu1 %v2553_v23 }
 0x4f3   :  { %v2557_v27 = vpack.c.bf16 %v1017_v25, %v1016_v26 }
 0x4f5   :  { %2098 = vmatprep.subr.bf16.mxu1 %v2557_v27 }
 0x4f6   :  { %2100 = vmatpush3.bf16.msra.mxu1 %v2557_v27 }
 0x4f7   :  { %2113 = vmatprep.subr.bf16.mxu1 %v2248_v35 }
 0x4f9   :  { %1946 = vmatmul.mubr.msk.f32.vlgmr.msra.gmra.mrb[14].mxu1 %vm493_vm5, %v1649_v28 }
 0x5cc   :  { %v1947_v38 = vpop.f32.mrb[14].mxu1 }
 0x5cd   :  { %v1106_v40 = vadd.f32 %v1947_v38, %v1026_v37  ;;  %v1100_v41 = vpop.f32.mrb[15].mxu1 }
 0x5ce   :  { %v1101_v42 = vadd.f32 %v1100_v41, %v1021_v39 }
 0x5cf   :  { %v1675_v43 = vmul.f32 -1.442695, %v1106_v40 }
 0x5d0   :  { %v1674_v44 = vmul.f32 -1.442695, %v1101_v42 }
 0x5d1   :  { %2195 = vpow2.f32 %v1675_v43 }
 0x5d2   :  { %2197 = vpow2.f32 %v1674_v44 }
 0x5db   :  { %v2196_v45 = vpop.eup %2195 }
 0x5dc   :  { %v2198_v46 = vpop.eup %2197  ;;  %v1116_v47 = vadd.f32 1.0, %v2196_v45  ;;  %v1367_v45 = vpop.permute.xlu0 %1366 }
 0x5dd   :  { %v1115_v48 = vadd.f32 1.0, %v2198_v46 }
 0x5de   :  { %2199 = vrcp.f32 %v1116_v47 }
 0x5df   :  { %2201 = vrcp.f32 %v1115_v48 }
 0x5e8   :  { %v2200_v49 = vpop.eup %2199 }
 0x5e9   :  { %v2202_v50 = vpop.eup %2201  ;;  %v1122_v51 = vmul.f32 %v2200_v49, %v1912_v29  ;;  %v1124_v52 = vmul.f32 %v2200_v49, %v1915_v31  ;;  %v1126_v53 = vmul.f32 %v2200_v49, %v1918_v33  ;;  %v1135_v29 = vld [vmem:[%s2648_s11 + $0x8] sm:$0xff]  ;;  %v1137_v31 = vld [vmem:[%s2648_s11 + $0x18] sm:$0xff]  ;;  %v1133_v33 = vld [vmem:[%s2647_s10] sm:$0x7] }
 0x5ea   :  { %v1121_v54 = vmul.f32 %v2202_v50, %v820_v30  ;;  %v1123_v55 = vmul.f32 %v2202_v50, %v830_v32  ;;  %v1125_v56 = vmul.f32 %v2202_v50, %v840_v34  ;;  %v1136_v30 = vld [vmem:[%s2648_s11 + $0x10] sm:$0xff]  ;;  %v2250_v32 = vmov 0.0   ;;  %v1362_v34 = vpop.permute.xlu1 %1361 }
 0x5eb   :  { %1981 = vmatprep.mubr.msk.f32.mxu1 %vm2249_vm14, %v2250_v32 }
 0x5ec   :  { %v2101_v57 = vpack.c.bf16 %v1122_v51, %v1121_v54  ;;  %v2105_v58 = vpack.c.bf16 %v1124_v52, %v1123_v55  ;;  %v2109_v59 = vpack.c.bf16 %v1126_v53, %v1125_v56 }
 0x5ee   :  { %2102 = vmatprep.subr.bf16.mxu0 %v2101_v57  ;;  %2115 = vmatpush3.bf16.msra.mxu1 %v2101_v57  ;;  %v1372_v42 = vpop.permute.xlu1 %1371 }
 0x5ef   :  { %2104 = vmatpush3.bf16.msra.mxu0 %v2101_v57  ;;  %2116 = vmatprep.subr.bf16.mxu1 %v2248_v35 }
 0x5f0   :  { %2106 = vmatprep.subr.bf16.mxu0 %v2105_v58 }
 0x5f2   :  { %2118 = vmatpush3.bf16.msra.mxu1 %v2105_v58 }
 0x5f3   :  { %2108 = vmatpush3.bf16.msra.mxu0 %v2105_v58  ;;  %2119 = vmatprep.subr.bf16.mxu1 %v2248_v35 }
 0x5f4   :  { %2110 = vmatprep.subr.bf16.mxu0 %v2109_v59 }
 0x5f6   :  { %2121 = vmatpush3.bf16.msra.mxu1 %v2109_v59 }
 0x5f7   :  { %2112 = vmatpush3.bf16.msra.mxu0 %v2109_v59  ;;  %2134 = vmatprep.subr.bf16.mxu1 %v2248_v35 }
 0x5f8   :  { %2123 = vmatprep.subr.bf16.mxu0 %v2553_v23 }
 0x5f9   :  { %1982 = vmatmul.mubr.msk.f32.vlgmr.msra.gmra.mrb[16].mxu1 %vm87_vm0, %v1133_v33 }
 0x5fa   :  { %1961 = vmatmul.mubr.msk.f32.vlgmr.msra.gmra.mrb[20].mxu0 %vm87_vm0, %v1128_v60  ;;  %2010 = vmatprep.mubr.msk.f32.mxu1 %vm2249_vm14, %v2250_v32 }
 0x5fb   :  { %2125 = vmatpush3.bf16.msra.mxu0 %v2553_v23  ;;  %1963 = vmatprep.mubr.msk.f32.mxu0 %vm87_vm0, %v1129_v61 }
 0x5fc   :  { %2127 = vmatprep.subr.bf16.mxu0 %v2557_v27 }
 0x5fe   :  { %1964 = vmatmul.mubr.msk.f32.gmra.mrb[22].mxu0 %vm87_vm0, %v1130_v62 }
 0x5ff   :  { %2129 = vmatpush3.bf16.msra.mxu0 %v2557_v27  ;;  %1966 = vmatprep.mubr.msk.f32.mxu0 %vm87_vm0, %v1131_v63 }
 0x602   :  { %1967 = vmatmul.mubr.msk.f32.gmra.mrb[24].mxu0 %vm87_vm0, %v1132_v0 }
 0x603   :  { %1996 = vmatprep.mubr.msk.f32.mxu0 %vm87_vm0, %v1134_v1 }
 0x6cd   :  { %v1962_v2 = vpop.f32.mrb[20].mxu0 }
 0x6ce   :  { %v1228_v3 = vpop.f32.mrb[21].mxu0  ;;  %v1331_v5 = vmul.f32 %v1962_v2, %v1962_v2 }
 0x6cf   :  { %v1330_v8 = vmul.f32 %v1228_v3, %v1228_v3 }
 0x6d1   :  { %v1965_v4 = vpop.f32.mrb[22].mxu0 }
 0x6d2   :  { %v1333_v6 = vmul.f32 %v1965_v4, %v1965_v4  ;;  %v1238_v7 = vpop.f32.mrb[23].mxu0 }
 0x6d3   :  { %v1332_v9 = vmul.f32 %v1238_v7, %v1238_v7 }
 0x6d4   :  { %v1335_v10 = vadd.f32 %v1333_v6, %v1331_v5  ;;  %v1142_v5 = vld [vmem:[%s2650_s13] sm:$0x1]  ;;  %v1326_v6 = vpop.f32.mrb[16].mxu1  ;;  %s2223_s13 = scalar_lea.vmem %s1597_s24, 64 }
 0x6d5   :  { %v1334_v11 = vadd.f32 %v1332_v9, %v1330_v8  ;;  %v1968_v12 = vpop.f32.mrb[24].mxu0  ;;  %v1983_v7 = vpop.f32.mrb[17].mxu1  ;;  %v1504_v8 = vlaneseq  ;;  %p2224_p0 = scmp.ne.s32.totalorder %s1597_s24, %s2223_s13  ;;  %p2229_p2 = scmp.lt.s32.totalorder %s2223_s13, %s2223_s13 }
 0x6d6   :  { %v1337_v13 = vmul.f32 %v1968_v12, %v1968_v12  ;;  %v1248_v14 = vpop.f32.mrb[25].mxu0 }
 0x6d7   :  { %v1336_v15 = vmul.f32 %v1248_v14, %v1248_v14  ;;  %v1505_v9 = vshrl.u32 %v1504_v8, 7  ;;  %p2230_p3 = por %p2229_p2, %p2228_p1 }
 0x6d8   :  { %v1339_v16 = vadd.f32 %v1337_v13, %v1335_v10 }
 0x6d9   :  { %v1338_v17 = vadd.f32 %v1336_v15, %v1334_v11  ;;  %v1506_v10 = vsub.s32 0, %v1505_v9  ;;  %v1502_v11 = vpop.permute.xlu0 %1501  ;;  %p2231_p4 = pnand %p2230_p3, %p2224_p0 }
 0x6da   :  { %2203 = vrsqrt.f32 %v1339_v16  ;;  %vm1349_vm10 = vcmp.eq.f32.partialorder %v1339_v16, inf  ;;  %v1352_v22 = vand.u32 2147483648, %v1339_v16  ;;  %vm1351_vm12 = vcmp.eq.f32.partialorder %v1339_v16, 0.0 }
 0x6db   :  { %2205 = vrsqrt.f32 %v1338_v17  ;;  %vm1342_vm11 = vcmp.eq.f32.partialorder %v1338_v17, inf  ;;  %v1345_v23 = vand.u32 2147483648, %v1338_v17  ;;  %vm1344_vm13 = vcmp.eq.f32.partialorder %v1338_v17, 0.0 }
 0x6dc   :  { %v1507_v12 = vrot.slane %v1502_v11, %v1506_v10 }
 0x6e4   :  { %v2204_v18 = vpop.eup %2203 }
 0x6e5   :  { %v2206_v19 = vpop.eup %2205  ;;  %v1348_v20 = vmul.f32 %v2204_v18, %v1339_v16 }
 0x6e6   :  { %v1341_v21 = vmul.f32 %v2206_v19, %v1338_v17 }
 0x6e7   :  { %v1350_v24 = vsel %vm1349_vm10, %v1339_v16, %v1348_v20 }
 0x6e8   :  { %v1343_v25 = vsel %vm1342_vm11, %v1338_v17, %v1341_v21  ;;  %v1353_v26 = vsel %vm1351_vm12, %v1352_v22, %v1350_v24 }
 0x6e9   :  { %v1346_v27 = vsel %vm1344_vm13, %v1345_v23, %v1343_v25 }
 0x6ea   :  { %v2130_v28 = vpack.c.bf16 %v1353_v26, %v1346_v27 }
 0x6ec   :  { %2131 = vmatprep.subr.bf16.mxu0 %v2130_v28 }
 0x6ed   :  { %2133 = vmatpush3.bf16.msra.mxu0 %v2130_v28 }
 0x6f0   :  { %1997 = vmatmul.mubr.msk.f32.vlgmr.msra.gmra.mrb[26].mxu0 %vm87_vm0, %v1135_v29 }
 0x6f1   :  { %1999 = vmatprep.mubr.msk.f32.mxu0 %vm87_vm0, %v1136_v30 }
 0x6f4   :  { %2000 = vmatmul.mubr.msk.f32.gmra.mrb[28].mxu0 %vm87_vm0, %v1137_v31 }
 0x7c3   :  { %v1998_v37 = vpop.f32.mrb[26].mxu0 }
 0x7c4   :  { %v1458_v38 = vadd.f32 %v1998_v37, %v1362_v34  ;;  %v1452_v39 = vpop.f32.mrb[27].mxu0 }
 0x7c5   :  { %v1453_v40 = vadd.f32 %v1452_v39, %v1357_v36 }
 0x7c6   :  { %v1688_v41 = vmul.f32 -1.442695, %v1458_v38 }
 0x7c7   :  { %v1687_v43 = vmul.f32 -1.442695, %v1453_v40  ;;  %v2001_v44 = vpop.f32.mrb[28].mxu0 }
 0x7c8   :  { %2207 = vpow2.f32 %v1688_v41  ;;  %v1468_v46 = vadd.f32 %v2001_v44, %v1372_v42  ;;  %v1462_v47 = vpop.f32.mrb[29].mxu0 }
 0x7c9   :  { %2209 = vpow2.f32 %v1687_v43  ;;  %v1463_v48 = vadd.f32 %v1462_v47, %v1367_v45 }
 0x7ca   :  { %v1690_v49 = vmul.f32 -1.442695, %v1468_v46 }
 0x7cb   :  { %v1689_v50 = vmul.f32 -1.442695, %v1463_v48 }
 0x7cc   :  { %2211 = vpow2.f32 %v1690_v49 }
 0x7cd   :  { %2213 = vpow2.f32 %v1689_v50 }
 0x7d2   :  { %v2208_v51 = vpop.eup %2207 }
 0x7d3   :  { %v2210_v52 = vpop.eup %2209  ;;  %v1484_v53 = vadd.f32 1.0, %v2208_v51 }
 0x7d4   :  { %v1483_v54 = vadd.f32 1.0, %v2210_v52 }
 0x7d5   :  { %2215 = vrcp.f32 %v1484_v53 }
 0x7d6   :  { %v2212_v55 = vpop.eup %2211  ;;  %2217 = vrcp.f32 %v1483_v54 }
 0x7d7   :  { %v2214_v56 = vpop.eup %2213  ;;  %v1486_v57 = vadd.f32 1.0, %v2212_v55 }
 0x7d8   :  { %v1485_v58 = vadd.f32 1.0, %v2214_v56 }
 0x7d9   :  { %2219 = vrcp.f32 %v1486_v57 }
 0x7da   :  { %2221 = vrcp.f32 %v1485_v58 }
 0x7df   :  { %v2216_v59 = vpop.eup %2215 }
 0x7e0   :  { %v2218_v60 = vpop.eup %2217  ;;  %v1496_v61 = vmul.f32 %v2216_v59, %v1458_v38 }
 0x7e1   :  { %v1495_v62 = vmul.f32 %v2218_v60, %v1453_v40 }
 0x7e3   :  { %v2220_v63 = vpop.eup %2219  ;;  %v2135_v0 = vpack.c.bf16 %v1496_v61, %v1495_v62 }
 0x7e4   :  { %v2222_v1 = vpop.eup %2221  ;;  %v1498_v2 = vmul.f32 %v2220_v63, %v1468_v46 }
 0x7e5   :  { %v1497_v3 = vmul.f32 %v2222_v1, %v1463_v48  ;;  %2136 = vmatpush3.bf16.msra.mxu1 %v2135_v0 }
 0x7e6   :  { %2137 = vmatprep.subr.bf16.mxu1 %v2248_v35  ;;  %v1586_v35 = vld [vmem:[%s2638_s1] sm:$0x7] }
 0x7e7   :  { %v2138_v4 = vpack.c.bf16 %v1498_v2, %v1497_v3 }
 0x7e9   :  { %2139 = vmatpush3.bf16.msra.mxu1 %v2138_v4 }
 0x7ec   :  { %2011 = vmatmul.mubr.msk.f32.vlgmr.msra.gmra.mrb[18].mxu1 %vm493_vm5, %v1142_v5 }
 0x8bf   :  { %v1577_v13 = vpop.f32.mrb[18].mxu1 }
 0x8c0   :  { %v1578_v14 = vadd.f32 %v1577_v13, %v1507_v12  ;;  %v2012_v15 = vpop.f32.mrb[19].mxu1 }
 0x8c2   :  { %v1584_v16 = vrot.slane %v1578_v14, %v1506_v10 }
 0x8c4   :  { %v1585_v17 = vmul.f32 %v1584_v16, %v1326_v6 }
 0x8c6   :  { %v1587_v18 = vadd.f32 %v1586_v35, %v1585_v17 }
 0x8c8   :  { %1589 = vst.msk [vmem:[#allocation3] sm:$0x7] %vm1588_vm15, %v1587_v18 }
 0x8c9   :  { %2234 = shalt.err (!%p2231_p4)
}
 0x8ca   :  { %s2235_s7 = scalar_lea.hbm %s2652_s15, 64 }
 0x8cb   :  { %p2236_p5 = scmp.ne.s32.totalorder %s2652_s15, %s2235_s7  ;;  %p2239_p6 = scmp.lt.u32.totalorder %s2235_s7, %s2652_s15 }
 0x8cd   :  { %p2241_p7 = pnand %p2239_p6, %p2236_p5 }
 0x8cf   :  { %2244 = shalt.err (!%p2241_p7)
}
 0x8d0   :  { %1599 = dma.vmem_to_hbm [thread:$0]  %s1597_s24, 64, %s2652_s15, [#allocation4]  }
 0x8d1   :  { %2245 = dma.done.wait [#allocation4], 64  }
 0x8d2   :  { %2246 = vsyncadd [#allocation4], 4294967232 }
 0x8d3   :  { %1603 = vsyncpa [#allocation4], 1 }

</bundles_post_ra>
